<compile_context>
chip_gen: v6e
topology: v6e:2x2x1
jax: 0.10.0
libtpu: 0.0.40
codegen_flags: <defaults>
</compile_context>

<pallas_src>
import numpy as np
import jax
import jax.numpy as jnp
from jax.experimental import pallas as pl
from jax.experimental.pallas import tpu as pltpu


def _round_up(x, m):
    return ((x + m - 1) // m) * m


# ----------------------------------------------------------------------------
# Static routing tables for the soft decision tree.
#
# In the PyTorch code, `decisions` has num_leaves entries; index 0 is unused,
# indices 1 .. 2^depth - 1 are the internal nodes (level l uses indices
# 2^l .. 2^(l+1)-1).  Leaf `l`'s probability is the product over levels of
# either d[node] or (1 - d[node]) depending on which side of the node the
# leaf falls on.  Per level we encode a one-hot node->leaf gather matrix M and
# a left/right bit per leaf.
# ----------------------------------------------------------------------------
def _tree_routing_tables(depth):
    L = 2 ** depth
    M = np.zeros((depth, L, L), dtype=np.float32)
    bits = np.zeros((depth, 1, L), dtype=np.float32)
    for level in range(depth):
        begin = 2 ** level                 # first node index of this level
        half = L >> (level + 1)            # leaves per (node, side)
        for leaf in range(L):
            node_local = leaf // (2 * half)
            bit = (leaf // half) % 2
            M[level, begin + node_local, leaf] = 1.0
            bits[level, 0, leaf] = float(bit)
    return M, bits


# ----------------------------------------------------------------------------
# Fused Pallas kernel (compute in transposed layout: batch on lanes), but the
# x block arrives UNTRANSPOSED ([TB, F], contiguous rows of HBM) and the
# contraction over F happens in-kernel via dot_general.
#   x     : [TB, F]            input tile (both treated & control rows)
#   w1T   : [2H, F]            mask-folded first Linear, both heads stacked
#   b1    : [2H, 1]
#   w2T   : [2L, 2H]           block-diagonal second Linear, both heads
#   b2    : [2L, 1]
#   MTs   : [depth*2L, 2L]     all per-level node->leaf gathers stacked (block-diag, T)
#   bits  : [depth*2L, 1]      0 -> use d, 1 -> use (1 - d)
#   sign  : [depth*2L, 1]      1 - 2*bits  (affine select)
#   piT   : [2, 2L]            row 0 = [pi, 0] (t-head), row 1 = [0, pi] (c-head)
#   out   : [2, TB]            row 0 = t-head output, row 1 = c-head output
# ----------------------------------------------------------------------------
def cndt_fused_kernel(x_ref, w1T_ref, b1_ref, w2T_ref, b2_ref,
                      MTs_ref, bits_ref, sign_ref, piT_ref, out_ref):
    # decision_fn (both heads): Linear -> ReLU -> (Dropout = identity) -> Linear
    # Contract over F of the untransposed x block: h[j, b] = sum_f w1T[j, f] * x[b, f].
    h = jax.lax.dot_general(
        w1T_ref[...], x_ref[...],
        dimension_numbers=(((1,), (1,)), ((), ())),
        preferred_element_type=jnp.float32) + b1_ref[...]                # [2H, TB]
    h = jnp.maximum(h, 0.0)
    logits = jnp.dot(w2T_ref[...], h,
                     preferred_element_type=jnp.float32) + b2_ref[...]   # [2L, TB]
    # sigmoid(z) = 0.5 * tanh(0.5 z) + 0.5   (single EUP tanh + one VPU FMA)
    d = 0.5 * jnp.tanh(0.5 * logits) + 0.5                               # [2L, TB]

    # Soft tree routing, all levels in ONE MXU call:
    #   g[lvl*2L + leaf, b] = d[node(lvl, leaf), b]
    #   factor = bits + sign * g   ( == g where bit=0,  1-g where bit=1 )
    g = jnp.dot(MTs_ref[...], d, preferred_element_type=jnp.float32)     # [depth*2L, TB]
    factor = bits_ref[...] + sign_ref[...] * g                           # [depth*2L, TB]

    L2 = piT_ref.shape[1]                  # 2 * num_leaves (static)
    depth = MTs_ref.shape[0] // L2         # static
    mu = factor[0:L2]                      # static, sublane-aligned slices (L2 % 8 == 0)
    for level in range(1, depth):
        mu = mu * factor[level * L2:(level + 1) * L2]                    # [2L, TB]

    # outputs (both heads) = piT @ mu  -> lane-dense [2, TB] store
    out_ref[...] = jnp.dot(piT_ref[...], mu, preferred_element_type=jnp.float32)


def cndt_fused_call(x_pad, fp, *, tb):
    n_pad, F = x_pad.shape
    H2 = fp["w1T"].shape[0]
    L2 = fp["piT"].shape[1]
    DL2 = fp["MTs"].shape[0]

    # NOTE: the 8 weight/table operands have constant index_maps, so Pallas keeps them
    # resident in VMEM across grid steps (no per-step re-DMA) — the review's accepted
    # alternative to pipeline_mode=pl.Buffered(1).
    return pl.pallas_call(
        cndt_fused_kernel,
        out_shape=jax.ShapeDtypeStruct((2, n_pad), jnp.float32),
        grid_spec=pltpu.PrefetchScalarGridSpec(
            num_scalar_prefetch=0,
            grid=(n_pad // tb,),
            in_specs=[
                pl.BlockSpec((tb, F), lambda i: (i, 0)),       # x tile (contiguous rows)
                pl.BlockSpec((H2, F), lambda i: (0, 0)),       # w1T  (resident)
                pl.BlockSpec((H2, 1), lambda i: (0, 0)),       # b1
                pl.BlockSpec((L2, H2), lambda i: (0, 0)),      # w2T
                pl.BlockSpec((L2, 1), lambda i: (0, 0)),       # b2
                pl.BlockSpec((DL2, L2), lambda i: (0, 0)),     # MTs (stacked levels)
                pl.BlockSpec((DL2, 1), lambda i: (0, 0)),      # bits
                pl.BlockSpec((DL2, 1), lambda i: (0, 0)),      # sign
                pl.BlockSpec((2, L2), lambda i: (0, 0)),       # piT
            ],
            out_specs=pl.BlockSpec((2, tb), lambda i: (0, i)),
        ),
        compiler_params=pltpu.CompilerParams(
            dimension_semantics=("parallel",),                 # megacore sharding on v7x
            vmem_limit_bytes=48 * 1024 * 1024),                # large tiles on v5e too
    )(x_pad, fp["w1T"], fp["b1"], fp["w2T"], fp["b2"],
      fp["MTs"], fp["bits"], fp["sign"], fp["piT"])


# ----------------------------------------------------------------------------
# Host-side parameter fusion (done once per model).
# ----------------------------------------------------------------------------
def fuse_params(params, depth):
    L = 2 ** depth
    L2 = 2 * L
    maskT = params["maskT"]                                  # [F, U]

    # Fold the 0/1 feature-selection mask into w1 (exact in f32).
    w1t_eff = maskT @ params["t"]["w1"]                      # [F, H]
    w1c_eff = maskT @ params["c"]["w1"]                      # [F, H]
    w1T = jnp.concatenate([w1t_eff.T, w1c_eff.T], axis=0)    # [2H, F]
    b1 = jnp.concatenate([params["t"]["b1"].reshape(-1, 1),
                          params["c"]["b1"].reshape(-1, 1)], axis=0)   # [2H, 1]

    H = params["t"]["w1"].shape[1]
    zLH = jnp.zeros((L, H), jnp.float32)
    w2T = jnp.concatenate([
        jnp.concatenate([params["t"]["w2"].T, zLH], axis=1),
        jnp.concatenate([zLH, params["c"]["w2"].T], axis=1)], axis=0)  # [2L, 2H]
    b2 = jnp.concatenate([params["t"]["b2"].reshape(-1, 1),
                          params["c"]["b2"].reshape(-1, 1)], axis=0)   # [2L, 1]

    # Stack all tree levels into a single gather matrix / select tables
    # so the kernel needs only one MXU call for the routing.
    M_np, bits_np = _tree_routing_tables(depth)
    MTs = np.zeros((depth * L2, L2), np.float32)
    bits_s = np.zeros((depth * L2, 1), np.float32)
    for lvl in range(depth):
        r0 = lvl * L2
        MTs[r0:r0 + L, :L] = M_np[lvl].T                     # t-head block
        MTs[r0 + L:r0 + L2, L:] = M_np[lvl].T                # c-head block
        bits_s[r0:r0 + L, 0] = bits_np[lvl, 0, :]
        bits_s[r0 + L:r0 + L2, 0] = bits_np[lvl, 0, :]
    sign_s = 1.0 - 2.0 * bits_s

    pi = params["pi"].reshape(-1)                            # [L]
    zL = jnp.zeros((L,), jnp.float32)
    piT = jnp.stack([jnp.concatenate([pi, zL]),
                     jnp.concatenate([zL, pi])], axis=0)     # [2, 2L]

    return {"w1T": w1T, "b1": b1, "w2T": w2T, "b2": b2,
            "MTs": jnp.asarray(MTs), "bits": jnp.asarray(bits_s),
            "sign": jnp.asarray(sign_s), "piT": piT}


# ----------------------------------------------------------------------------
# Full module forward (treated head, control head, ATE estimate) — one kernel call.
# ----------------------------------------------------------------------------
def cndt_icfr_forward(features_treated, features_control, fused_params,
                      *, block_batch=8192):
    B = features_treated.shape[0]
    x_all = jnp.concatenate([features_treated, features_control],
                            axis=0).astype(jnp.float32)                 # [2B, F]
    n = 2 * B
    n_min = _round_up(n, 128)
    # Large tile to amortize per-grid-step overhead, but keep >= 2 tiles when the
    # batch allows so the "parallel" axis can be split across v7x's 2 TensorCores.
    tb = min(block_batch, max(128, _round_up(n_min // 2, 128)))
    n_pad = _round_up(n, tb)
    x_pad = jnp.pad(x_all, ((0, n_pad - n), (0, 0)))                    # [n_pad, F]

    out = cndt_fused_call(x_pad, fused_params, tb=tb)                   # [2, n_pad]
    head_t = out[0, :n]        # decision_fn_t applied to [xt; xc]
    head_c = out[1, :n]        # decision_fn_c applied to [xt; xc]

    output_treated = head_t[:B]
    output_control = head_c[B:]
    mu1 = jnp.mean(head_t[B:])     # t-head on control features
    mu0 = jnp.mean(head_c[:B])     # c-head on treated features
    tau_est = mu1 - mu0
    return output_treated, output_control, tau_est


# ----------------------------------------------------------------------------
# Pure-JAX reference that mirrors the PyTorch code (for a correctness check).
# ----------------------------------------------------------------------------
def _ref_branch(x, maskT, w1, b1, w2, b2, depth, pi_vec):
    B = x.shape[0]
    L = 2 ** depth
    used = x @ maskT
    h = jnp.maximum(used @ w1 + b1, 0.0)
    d = jax.nn.sigmoid(h @ w2 + b2)                       # [B, L]
    dec = jnp.stack([d, 1.0 - d], axis=2)                 # [B, L, 2]
    mu = jnp.ones((B, 1, 1), jnp.float32)
    begin, end = 1, 2
    for level in range(depth):
        mu = mu.reshape(B, -1, 1)
        mu = jnp.tile(mu, (1, 1, 2))
        mu = mu * dec[:, begin:end, :]
        begin = end
        end = begin + 2 ** (level + 1)
    mu = mu.reshape(B, L)
    return mu @ pi_vec


def _ref_forward(xt, xc, params, depth):
    pi_vec = params["pi"].reshape(-1)

    def branch(x, head):
        return _ref_branch(x, params["maskT"], head["w1"], head["b1"],
                           head["w2"], head["b2"], depth, pi_vec)

    ot = branch(xt, params["t"])
    oc = branch(xc, params["c"])
    tau = jnp.mean(branch(xc, params["t"])) - jnp.mean(branch(xt, params["c"]))
    return ot, oc, tau


# ----------------------------------------------------------------------------
# Deterministic parameter construction (shapes from the module's __init__).
# ----------------------------------------------------------------------------
def make_params(key, depth, num_features, hidden_size, used_features_rate):
    L = 2 ** depth
    U = int(num_features * used_features_rate)
    ks = jax.random.split(key, 10)

    # used_features_mask = eye(F)[randperm(F)[:U]]  -> [U, F]; we keep its transpose.
    perm = jax.random.permutation(ks[0], num_features)[:U]
    mask = jnp.eye(num_features, dtype=jnp.float32)[perm]        # [U, F]
    maskT = mask.T                                               # [F, U]

    def linear(kw, kb, fan_in, fan_out):
        bound = 1.0 / np.sqrt(fan_in)
        w = jax.random.uniform(kw, (fan_in, fan_out), jnp.float32, -bound, bound)
        b = jax.random.uniform(kb, (1, fan_out), jnp.float32, -bound, bound)
        return w, b

    w1t, b1t = linear(ks[1], ks[2], U, hidden_size)
    w2t, b2t = linear(ks[3], ks[4], hidden_size, L)
    w1c, b1c = linear(ks[5], ks[6], U, hidden_size)
    w2c, b2c = linear(ks[7], ks[8], hidden_size, L)

    pi = jax.random.normal(ks[9], (L, 1), jnp.float32)           # leaf values

    return {
        "maskT": maskT, "pi": pi,
        "t": {"w1": w1t, "b1": b1t, "w2": w2t, "b2": b2t},
        "c": {"w1": w1c, "b1": b1c, "w2": w2c, "b2": b2c},
    }


if __name__ == "__main__":
    depth = 3
    num_features = 16
    hidden_size = 32
    used_features_rate = 0.5
    batch = 8

    key = jax.random.PRNGKey(0)
    k_xt, k_xc, k_p = jax.random.split(key, 3)
    features_treated = jax.random.normal(k_xt, (batch, num_features), jnp.float32)
    features_control = jax.random.normal(k_xc, (batch, num_features), jnp.float32)

    params = make_params(k_p, depth, num_features, hidden_size, used_features_rate)
    fused = fuse_params(params, depth)

    out_t, out_c, tau = jax.block_until_ready(
        cndt_icfr_forward(features_treated, features_control, fused))

    # Correctness check against a pure-JAX transcription of the PyTorch forward.
    ref_t, ref_c, ref_tau = _ref_forward(features_treated, features_control,
                                         params, depth)
    assert np.allclose(np.asarray(out_t), np.asarray(ref_t), atol=1e-5, rtol=1e-5)
    assert np.allclose(np.asarray(out_c), np.asarray(ref_c), atol=1e-5, rtol=1e-5)
    assert np.allclose(float(tau), float(ref_tau), atol=1e-5, rtol=1e-5)

    print("KERNEL_OK")
</pallas_src>

<mosaic_0001>
module attributes {stable_mosaic.version = 11 : i64} {
  func.func @cndt_fused_kernel(%arg0: i32, %arg1: memref<128x16xf32, #tpu.memory_space<vmem>>, %arg2: memref<64x16xf32, #tpu.memory_space<vmem>>, %arg3: memref<64x1xf32, #tpu.memory_space<vmem>>, %arg4: memref<16x64xf32, #tpu.memory_space<vmem>>, %arg5: memref<16x1xf32, #tpu.memory_space<vmem>>, %arg6: memref<48x16xf32, #tpu.memory_space<vmem>>, %arg7: memref<48x1xf32, #tpu.memory_space<vmem>>, %arg8: memref<48x1xf32, #tpu.memory_space<vmem>>, %arg9: memref<2x16xf32, #tpu.memory_space<vmem>>, %arg10: memref<2x128xf32, #tpu.memory_space<vmem>>) attributes {dimension_semantics = [#tpu.dimension_semantics<parallel>], iteration_bounds = array<i64: 1>, scalar_prefetch = 0 : i64, scratch_operands = 0 : i64, tpu.core_type = #tpu.core_type<tc>, window_params = [{transform_indices = @transform_0, window_bounds = array<i64: 128, 16>}, {pipeline_mode = #tpu.pipeline_mode<synchronous>, transform_indices = @transform_1, window_bounds = array<i64: 64, 16>}, {pipeline_mode = #tpu.pipeline_mode<synchronous>, transform_indices = @transform_2, window_bounds = array<i64: 64, 1>}, {pipeline_mode = #tpu.pipeline_mode<synchronous>, transform_indices = @transform_3, window_bounds = array<i64: 16, 64>}, {pipeline_mode = #tpu.pipeline_mode<synchronous>, transform_indices = @transform_4, window_bounds = array<i64: 16, 1>}, {pipeline_mode = #tpu.pipeline_mode<synchronous>, transform_indices = @transform_5, window_bounds = array<i64: 48, 16>}, {pipeline_mode = #tpu.pipeline_mode<synchronous>, transform_indices = @transform_6, window_bounds = array<i64: 48, 1>}, {pipeline_mode = #tpu.pipeline_mode<synchronous>, transform_indices = @transform_7, window_bounds = array<i64: 48, 1>}, {pipeline_mode = #tpu.pipeline_mode<synchronous>, transform_indices = @transform_8, window_bounds = array<i64: 2, 16>}, {transform_indices = @transform_9, window_bounds = array<i64: 2, 128>}]} {
    %c0 = arith.constant 0 : index
    %c0_0 = arith.constant 0 : index
    %0 = vector.load %arg2[%c0, %c0_0] : memref<64x16xf32, #tpu.memory_space<vmem>>, vector<64x16xf32>
    %c0_1 = arith.constant 0 : index
    %c0_2 = arith.constant 0 : index
    %1 = vector.load %arg1[%c0_1, %c0_2] : memref<128x16xf32, #tpu.memory_space<vmem>>, vector<128x16xf32>
    %cst = arith.constant dense<0.000000e+00> : vector<64x128xf32>
    %2 = tpu.matmul %0, %1, %cst {dimension_numbers = #tpu.dot_dimension_numbers<[1], [1], [0], [0], [0, 0, 1, 0], [], []>} : vector<64x16xf32>, vector<128x16xf32>, vector<64x128xf32> -> vector<64x128xf32>
    %c0_3 = arith.constant 0 : index
    %c0_4 = arith.constant 0 : index
    %3 = vector.load %arg3[%c0_3, %c0_4] : memref<64x1xf32, #tpu.memory_space<vmem>>, vector<64x1xf32>
    %4 = vector.broadcast %3 : vector<64x1xf32> to vector<64x128xf32>
    %5 = arith.addf %2, %4 : vector<64x128xf32>
    %cst_5 = arith.constant 0.000000e+00 : f32
    %6 = vector.broadcast %cst_5 : f32 to vector<64x128xf32>
    %7 = arith.maximumf %5, %6 : vector<64x128xf32>
    %c0_6 = arith.constant 0 : index
    %c0_7 = arith.constant 0 : index
    %8 = vector.load %arg4[%c0_6, %c0_7] : memref<16x64xf32, #tpu.memory_space<vmem>>, vector<16x64xf32>
    %cst_8 = arith.constant dense<0.000000e+00> : vector<16x128xf32>
    %9 = tpu.matmul %8, %7, %cst_8 {dimension_numbers = #tpu.dot_dimension_numbers<[1], [0], [0], [1], [0, 0, 1, 1], [], []>} : vector<16x64xf32>, vector<64x128xf32>, vector<16x128xf32> -> vector<16x128xf32>
    %c0_9 = arith.constant 0 : index
    %c0_10 = arith.constant 0 : index
    %10 = vector.load %arg5[%c0_9, %c0_10] : memref<16x1xf32, #tpu.memory_space<vmem>>, vector<16x1xf32>
    %11 = vector.broadcast %10 : vector<16x1xf32> to vector<16x128xf32>
    %12 = arith.addf %9, %11 : vector<16x128xf32>
    %cst_11 = arith.constant 5.000000e-01 : f32
    %13 = vector.broadcast %cst_11 : f32 to vector<16x128xf32>
    %14 = arith.mulf %13, %12 : vector<16x128xf32>
    %15 = math.tanh %14 : vector<16x128xf32>
    %cst_12 = arith.constant 5.000000e-01 : f32
    %16 = vector.broadcast %cst_12 : f32 to vector<16x128xf32>
    %17 = arith.mulf %16, %15 : vector<16x128xf32>
    %cst_13 = arith.constant 5.000000e-01 : f32
    %18 = vector.broadcast %cst_13 : f32 to vector<16x128xf32>
    %19 = arith.addf %17, %18 : vector<16x128xf32>
    %c0_14 = arith.constant 0 : index
    %c0_15 = arith.constant 0 : index
    %20 = vector.load %arg6[%c0_14, %c0_15] : memref<48x16xf32, #tpu.memory_space<vmem>>, vector<48x16xf32>
    %cst_16 = arith.constant dense<0.000000e+00> : vector<48x128xf32>
    %21 = tpu.matmul %20, %19, %cst_16 {dimension_numbers = #tpu.dot_dimension_numbers<[1], [0], [0], [1], [0, 0, 1, 1], [], []>} : vector<48x16xf32>, vector<16x128xf32>, vector<48x128xf32> -> vector<48x128xf32>
    %c0_17 = arith.constant 0 : index
    %c0_18 = arith.constant 0 : index
    %22 = vector.load %arg7[%c0_17, %c0_18] : memref<48x1xf32, #tpu.memory_space<vmem>>, vector<48x1xf32>
    %c0_19 = arith.constant 0 : index
    %c0_20 = arith.constant 0 : index
    %23 = vector.load %arg8[%c0_19, %c0_20] : memref<48x1xf32, #tpu.memory_space<vmem>>, vector<48x1xf32>
    %24 = vector.broadcast %23 : vector<48x1xf32> to vector<48x128xf32>
    %25 = arith.mulf %24, %21 : vector<48x128xf32>
    %26 = vector.broadcast %22 : vector<48x1xf32> to vector<48x128xf32>
    %27 = arith.addf %26, %25 : vector<48x128xf32>
    %28 = vector.extract_strided_slice %27 {offsets = [0, 0], sizes = [16, 128], strides = [1, 1]} : vector<48x128xf32> to vector<16x128xf32>
    %29 = vector.extract_strided_slice %27 {offsets = [16, 0], sizes = [16, 128], strides = [1, 1]} : vector<48x128xf32> to vector<16x128xf32>
    %30 = arith.mulf %28, %29 : vector<16x128xf32>
    %31 = vector.extract_strided_slice %27 {offsets = [32, 0], sizes = [16, 128], strides = [1, 1]} : vector<48x128xf32> to vector<16x128xf32>
    %32 = arith.mulf %30, %31 : vector<16x128xf32>
    %c0_21 = arith.constant 0 : index
    %c0_22 = arith.constant 0 : index
    %33 = vector.load %arg9[%c0_21, %c0_22] : memref<2x16xf32, #tpu.memory_space<vmem>>, vector<2x16xf32>
    %cst_23 = arith.constant dense<0.000000e+00> : vector<2x128xf32>
    %34 = tpu.matmul %33, %32, %cst_23 {dimension_numbers = #tpu.dot_dimension_numbers<[1], [0], [0], [1], [0, 0, 1, 1], [], []>} : vector<2x16xf32>, vector<16x128xf32>, vector<2x128xf32> -> vector<2x128xf32>
    %c0_24 = arith.constant 0 : index
    %c0_25 = arith.constant 0 : index
    %35 = vector.load %arg10[%c0_24, %c0_25] : memref<2x128xf32, #tpu.memory_space<vmem>>, vector<2x128xf32>
    tpu.vector_store %arg10[%c0_24, %c0_25], %34 {strides = array<i32>} : memref<2x128xf32, #tpu.memory_space<vmem>>, vector<2x128xf32>,
    return
  }
  func.func @transform_0(%arg0: i32) -> (i32, i32) {
    %c0_i32 = arith.constant 0 : i32
    %c0_i32_0 = arith.constant 0 : i32
    return %arg0, %c0_i32 : i32, i32
  }
  func.func @transform_1(%arg0: i32) -> (i32, i32) {
    %c0_i32 = arith.constant 0 : i32
    %c0_i32_0 = arith.constant 0 : i32
    %c0_i32_1 = arith.constant 0 : i32
    return %c0_i32, %c0_i32_0 : i32, i32
  }
  func.func @transform_2(%arg0: i32) -> (i32, i32) {
    %c0_i32 = arith.constant 0 : i32
    %c0_i32_0 = arith.constant 0 : i32
    %c0_i32_1 = arith.constant 0 : i32
    return %c0_i32, %c0_i32_0 : i32, i32
  }
  func.func @transform_3(%arg0: i32) -> (i32, i32) {
    %c0_i32 = arith.constant 0 : i32
    %c0_i32_0 = arith.constant 0 : i32
    %c0_i32_1 = arith.constant 0 : i32
    return %c0_i32, %c0_i32_0 : i32, i32
  }
  func.func @transform_4(%arg0: i32) -> (i32, i32) {
    %c0_i32 = arith.constant 0 : i32
    %c0_i32_0 = arith.constant 0 : i32
    %c0_i32_1 = arith.constant 0 : i32
    return %c0_i32, %c0_i32_0 : i32, i32
  }
  func.func @transform_5(%arg0: i32) -> (i32, i32) {
    %c0_i32 = arith.constant 0 : i32
    %c0_i32_0 = arith.constant 0 : i32
    %c0_i32_1 = arith.constant 0 : i32
    return %c0_i32, %c0_i32_0 : i32, i32
  }
  func.func @transform_6(%arg0: i32) -> (i32, i32) {
    %c0_i32 = arith.constant 0 : i32
    %c0_i32_0 = arith.constant 0 : i32
    %c0_i32_1 = arith.constant 0 : i32
    return %c0_i32, %c0_i32_0 : i32, i32
  }
  func.func @transform_7(%arg0: i32) -> (i32, i32) {
    %c0_i32 = arith.constant 0 : i32
    %c0_i32_0 = arith.constant 0 : i32
    %c0_i32_1 = arith.constant 0 : i32
    return %c0_i32, %c0_i32_0 : i32, i32
  }
  func.func @transform_8(%arg0: i32) -> (i32, i32) {
    %c0_i32 = arith.constant 0 : i32
    %c0_i32_0 = arith.constant 0 : i32
    %c0_i32_1 = arith.constant 0 : i32
    return %c0_i32, %c0_i32_0 : i32, i32
  }
  func.func @transform_9(%arg0: i32) -> (i32, i32) {
    %c0_i32 = arith.constant 0 : i32
    %c0_i32_0 = arith.constant 0 : i32
    return %c0_i32, %arg0 : i32, i32
  }
}

</mosaic_0001>

<bundles_post_ra>
// kernel: tpu_custom_call.1
= control target key start
LH: loop header
LB: loop body
LE: loop exit
PB: predicated region body
PF: predicated region fallthrough
CT: control target
= control target key end

     0   :  { %vm105_vm0 = vcmask 130048   ;;  %v884_v2 = vmov 0   ;;  %s1155_s0 = inlined_call_operand.vmem [shape: f32[128,16], index: 0, kind: input, shape index: {}]   ;;  %s1156_s1 = inlined_call_operand.vmem [shape: f32[64,16], index: 1, kind: input, shape index: {}]   ;;  %s1157_s2 = inlined_call_operand.vmem [shape: f32[64,1], index: 2, kind: input, shape index: {}]   ;;  %s1158_s3 = inlined_call_operand.vmem [shape: f32[16,64], index: 3, kind: input, shape index: {}]   ;;  %s1159_s4 = inlined_call_operand.vmem [shape: f32[16,1], index: 4, kind: input, shape index: {}]   ;;  %s1160_s5 = inlined_call_operand.vmem [shape: f32[48,16], index: 5, kind: input, shape index: {}]   ;;  %s1161_s6 = inlined_call_operand.vmem [shape: f32[48,1], index: 6, kind: input, shape index: {}]   ;;  %s1162_s7 = inlined_call_operand.vmem [shape: f32[48,1], index: 7, kind: input, shape index: {}]   ;;  %s1163_s8 = inlined_call_operand.vmem [shape: f32[2,16], index: 8, kind: input, shape index: {}]   ;;  %s1164_s9 = inlined_call_operand.hbm [shape: f32[2,128], index: 9, kind: output, shape index: {}]  }
   0x1   :  { %v56_v0 = vld [vmem:[%s1155_s0 + $0x78] sm:$0xff]  ;;  %v55_v1 = vld [vmem:[%s1155_s0 + $0x70] sm:$0xff]  ;;  %856 = vset.pattern.permute.xlu0 %v884_v2  ;;  %857 = vset.pattern.permute.xlu1 %v884_v2  ;;  %v54_v3 = vld [vmem:[%s1155_s0 + $0x68] sm:$0xff] }
   0x2   :  { %769 = vmatprep.subr.msk.mxu0 %vm105_vm0, %v56_v0  ;;  %v33_v4 = vld [vmem:[%s1156_s1] sm:$0xff]  ;;  %v64_v6 = vld [vmem:[%s1157_s2 + $0x38] sm:$0xff]  ;;  %v62_v7 = vld [vmem:[%s1157_s2 + $0x28] sm:$0xff] }
   0x3   :  { %770 = vmatpush3.xpose.msk.msra.mxu0 %vm105_vm0, %v56_v0  ;;  %801 = vmatprep.mubr.msk.f32.mxu0 %vm105_vm0, %v33_v4  ;;  %v53_v5 = vld [vmem:[%s1155_s0 + $0x60] sm:$0xff]  ;;  %v63_v8 = vld [vmem:[%s1157_s2 + $0x30] sm:$0xff]  ;;  %v52_v10 = vld [vmem:[%s1155_s0 + $0x58] sm:$0xff] }
   0x4   :  { %771 = vmatprep.subr.msk.mxu0 %vm105_vm0, %v55_v1  ;;  %102 = vperm.xlu0 %856, %v64_v6   ;;  %v61_v9 = vld [vmem:[%s1157_s2 + $0x20] sm:$0xff]  ;;  %v60_v11 = vld [vmem:[%s1157_s2 + $0x18] sm:$0xff]  ;;  %v59_v12 = vld [vmem:[%s1157_s2 + $0x10] sm:$0xff] }
   0x5   :  { %92 = vperm.xlu1 %857, %v62_v7  }
   0x7   :  { %772 = vmatpush3.xpose.msk.msra.mxu0 %vm105_vm0, %v55_v1 }
   0x8   :  { %773 = vmatprep.subr.msk.mxu0 %vm105_vm0, %v54_v3  ;;  %97 = vperm.xlu0 %856, %v63_v8  }
   0x9   :  { %87 = vperm.xlu1 %857, %v61_v9  }
   0xb   :  { %774 = vmatpush3.xpose.msk.msra.mxu0 %vm105_vm0, %v54_v3 }
   0xc   :  { %775 = vmatprep.subr.msk.mxu0 %vm105_vm0, %v53_v5 }
   0xf   :  { %776 = vmatpush3.xpose.msk.msra.mxu0 %vm105_vm0, %v53_v5 }
  0x10   :  { %777 = vmatprep.subr.msk.mxu0 %vm105_vm0, %v52_v10 }
  0x11   :  { %14 = vsyncpa [#allocation3], 0  ;;  %v51_v13 = vld [vmem:[%s1155_s0 + $0x50] sm:$0xff]  ;;  %82 = vperm.xlu0 %856, %v60_v11   ;;  %77 = vperm.xlu1 %857, %v59_v12   ;;  %v58_v14 = vld [vmem:[%s1157_s2 + $0x8] sm:$0xff]  ;;  %vm305_vm1 = vcmask 523264   ;;  %vm886_vm2 = vmmov 0  }
  0x12   :  { %v57_v15 = vld [vmem:[%s1157_s2] sm:$0xff]  ;;  %v50_v16 = vld [vmem:[%s1155_s0 + $0x48] sm:$0xff]  ;;  %v523_v21 = vld [vmem:[%s1162_s7 + $0x18] sm:$0xff]  ;;  %s887_s21 = smov [#allocation2]  }
  0x13   :  { %778 = vmatpush3.xpose.msk.msra.mxu0 %vm105_vm0, %v52_v10  ;;  %v294_v17 = vld [vmem:[%s1159_s4 + $0x8] sm:$0xff]  ;;  %v293_v18 = vld [vmem:[%s1159_s4] sm:$0xff]  ;;  %v48_v22 = vld [vmem:[%s1155_s0 + $0x38] sm:$0xff]  ;;  %s683_s22 = sshll.u32 %s887_s21, 4  ;;  %s684_s22 = int_to_ptr.vmem [resolvable:$true] %s683_s22 }
  0x14   :  { %779 = vmatprep.subr.msk.mxu0 %vm105_vm0, %v51_v13  ;;  %v49_v19 = vld [vmem:[%s1155_s0 + $0x40] sm:$0xff]  ;;  %v521_v20 = vld [vmem:[%s1162_s7 + $0x8] sm:$0xff]  ;;  %v522_v24 = vld [vmem:[%s1162_s7 + $0x10] sm:$0xff]  ;;  %p867_p1 = scmp.lt.s32.totalorder %s684_s22, %s684_s22 }
  0x15   :  { %72 = vperm.xlu0 %856, %v58_v14   ;;  %67 = vperm.xlu1 %857, %v57_v15   ;;  %v520_v23 = vld [vmem:[%s1162_s7] sm:$0xff]  ;;  %v47_v25 = vld [vmem:[%s1155_s0 + $0x30] sm:$0xff]  ;;  %v525_v26 = vld [vmem:[%s1162_s7 + $0x28] sm:$0xff] }
  0x16   :  { %v515_v27 = vld [vmem:[%s1161_s6 + $0x8] sm:$0xff]  ;;  %v517_v29 = vld [vmem:[%s1161_s6 + $0x18] sm:$0xff]  ;;  %v524_v30 = vld [vmem:[%s1162_s7 + $0x20] sm:$0xff] }
  0x17   :  { %780 = vmatpush3.xpose.msk.msra.mxu0 %vm105_vm0, %v51_v13  ;;  %v46_v28 = vld [vmem:[%s1155_s0 + $0x28] sm:$0xff]  ;;  %v45_v31 = vld [vmem:[%s1155_s0 + $0x20] sm:$0xff]  ;;  %v516_v33 = vld [vmem:[%s1161_s6 + $0x10] sm:$0xff] }
  0x18   :  { %781 = vmatprep.subr.msk.mxu0 %vm105_vm0, %v50_v16  ;;  %v514_v32 = vld [vmem:[%s1161_s6] sm:$0xff]  ;;  %v44_v34 = vld [vmem:[%s1155_s0 + $0x18] sm:$0xff]  ;;  %v519_v35 = vld [vmem:[%s1161_s6 + $0x28] sm:$0xff] }
  0x19   :  { %302 = vperm.xlu0 %856, %v294_v17   ;;  %297 = vperm.xlu1 %857, %v293_v18   ;;  %v518_v36 = vld [vmem:[%s1161_s6 + $0x20] sm:$0xff]  ;;  %v43_v37 = vld [vmem:[%s1155_s0 + $0x10] sm:$0xff]  ;;  %v42_v38 = vld [vmem:[%s1155_s0 + $0x8] sm:$0xff] }
  0x1a   :  { %v41_v39 = vld [vmem:[%s1155_s0] sm:$0xff]  ;;  %v34_v40 = vld [vmem:[%s1156_s1 + $0x8] sm:$0xff]  ;;  %v35_v41 = vld [vmem:[%s1156_s1 + $0x10] sm:$0xff]  ;;  %s862_s0 = scalar_lea.vmem %s684_s22, 32 }
  0x1b   :  { %782 = vmatpush3.xpose.msk.msra.mxu0 %vm105_vm0, %v50_v16  ;;  %v36_v42 = vld [vmem:[%s1156_s1 + $0x18] sm:$0xff]  ;;  %v37_v43 = vld [vmem:[%s1156_s1 + $0x20] sm:$0xff]  ;;  %v38_v44 = vld [vmem:[%s1156_s1 + $0x28] sm:$0xff]  ;;  %p863_p0 = scmp.ne.s32.totalorder %s684_s22, %s862_s0  ;;  %p868_p2 = scmp.lt.s32.totalorder %s862_s0, %s862_s0 }
  0x1c   :  { %783 = vmatprep.subr.msk.mxu0 %vm105_vm0, %v49_v19  ;;  %v39_v45 = vld [vmem:[%s1156_s1 + $0x30] sm:$0xff]  ;;  %v40_v46 = vld [vmem:[%s1156_s1 + $0x38] sm:$0xff]  ;;  %v291_v47 = vld [vmem:[%s1158_s3] sm:$0xff] }
  0x1d   :  { %533 = vperm.xlu0 %856, %v521_v20   ;;  %543 = vperm.xlu1 %857, %v523_v21   ;;  %v292_v16 = vld [vmem:[%s1158_s3 + $0x8] sm:$0xff]  ;;  %v395_v17 = vld [vmem:[%s1160_s5] sm:$0xff]  ;;  %p869_p3 = por %p868_p2, %p867_p1 }
  0x1e   :  { %829 = vmatprep.mubr.msk.f32.mxu1 %vm305_vm1, %v291_v47 }
  0x1f   :  { %784 = vmatpush3.xpose.msk.msra.mxu0 %vm105_vm0, %v49_v19  ;;  %p870_p4 = pnand %p869_p3, %p863_p0 }
  0x20   :  { %785 = vmatprep.subr.msk.mxu0 %vm105_vm0, %v48_v22 }
  0x21   :  { %528 = vperm.xlu0 %856, %v520_v23   ;;  %538 = vperm.xlu1 %857, %v522_v24  }
  0x23   :  { %786 = vmatpush3.xpose.msk.msra.mxu0 %vm105_vm0, %v48_v22 }
  0x24   :  { %787 = vmatprep.subr.msk.mxu0 %vm105_vm0, %v47_v25 }
  0x25   :  { %553 = vperm.xlu0 %856, %v525_v26   ;;  %569 = vperm.xlu1 %857, %v515_v27  }
  0x27   :  { %788 = vmatpush3.xpose.msk.msra.mxu0 %vm105_vm0, %v47_v25 }
  0x28   :  { %789 = vmatprep.subr.msk.mxu0 %vm105_vm0, %v46_v28 }
  0x29   :  { %579 = vperm.xlu0 %856, %v517_v29   ;;  %548 = vperm.xlu1 %857, %v524_v30  }
  0x2b   :  { %790 = vmatpush3.xpose.msk.msra.mxu0 %vm105_vm0, %v46_v28 }
  0x2c   :  { %791 = vmatprep.subr.msk.mxu0 %vm105_vm0, %v45_v31 }
  0x2d   :  { %564 = vperm.xlu0 %856, %v514_v32   ;;  %574 = vperm.xlu1 %857, %v516_v33   ;;  %v396_v32 = vld [vmem:[%s1160_s5 + $0x8] sm:$0xff]  ;;  %v397_v33 = vld [vmem:[%s1160_s5 + $0x10] sm:$0xff] }
  0x2f   :  { %792 = vmatpush3.xpose.msk.msra.mxu0 %vm105_vm0, %v45_v31 }
  0x30   :  { %793 = vmatprep.subr.msk.mxu0 %vm105_vm0, %v44_v34 }
  0x31   :  { %589 = vperm.xlu0 %856, %v519_v35   ;;  %584 = vperm.xlu1 %857, %v518_v36   ;;  %v399_v35 = vld [vmem:[%s1160_s5 + $0x20] sm:$0xff]  ;;  %v400_v36 = vld [vmem:[%s1160_s5 + $0x28] sm:$0xff] }
  0x33   :  { %794 = vmatpush3.xpose.msk.msra.mxu0 %vm105_vm0, %v44_v34  ;;  %v398_v34 = vld [vmem:[%s1160_s5 + $0x18] sm:$0xff] }
  0x34   :  { %795 = vmatprep.subr.msk.mxu0 %vm105_vm0, %v43_v37 }
  0x37   :  { %796 = vmatpush3.xpose.msk.msra.mxu0 %vm105_vm0, %v43_v37  ;;  %v885_v37 = vmov 0.0  }
  0x38   :  { %797 = vmatprep.subr.msk.mxu0 %vm105_vm0, %v42_v38 }
  0x3b   :  { %798 = vmatpush3.xpose.msk.msra.mxu0 %vm105_vm0, %v42_v38 }
  0x3c   :  { %799 = vmatprep.subr.msk.mxu0 %vm105_vm0, %v41_v39 }
  0x3f   :  { %800 = vmatpush3.xpose.msk.msra.mxu0 %vm105_vm0, %v41_v39 }
  0x42   :  { %802 = vmatmul.mubr.msk.f32.vlgmr.msra.gmra.mxu0 %vm105_vm0, %v34_v40 }
  0x43   :  { %804 = vmatprep.mubr.msk.f32.mxu0 %vm105_vm0, %v35_v41 }
  0x46   :  { %805 = vmatmul.mubr.msk.f32.gmra.mxu0 %vm105_vm0, %v36_v42 }
  0x47   :  { %807 = vmatprep.mubr.msk.f32.mxu0 %vm105_vm0, %v37_v43 }
  0x4a   :  { %808 = vmatmul.mubr.msk.f32.gmra.mxu0 %vm105_vm0, %v38_v44 }
  0x4b   :  { %810 = vmatprep.mubr.msk.f32.mxu0 %vm105_vm0, %v39_v45 }
  0x4e   :  { %811 = vmatmul.mubr.msk.f32.gmra.mxu0 %vm105_vm0, %v40_v46 }
  0x7f   :  { %v103_v50 = vpop.permute.xlu0 %102 }
  0x80   :  { %v93_v52 = vpop.permute.xlu1 %92 }
  0x83   :  { %v98_v55 = vpop.permute.xlu0 %97 }
  0x84   :  { %v88_v57 = vpop.permute.xlu1 %87 }
  0x8c   :  { %v83_v0 = vpop.permute.xlu0 %82  ;;  %v78_v3 = vpop.permute.xlu1 %77 }
  0x90   :  { %v73_v8 = vpop.permute.xlu0 %72  ;;  %v68_v11 = vpop.permute.xlu1 %67 }
  0x94   :  { %v303_v18 = vpop.permute.xlu0 %302  ;;  %v298_v21 = vpop.permute.xlu1 %297 }
  0x98   :  { %v534_v38 = vpop.permute.xlu0 %533  ;;  %v544_v39 = vpop.permute.xlu1 %543 }
  0x9c   :  { %v529_v40 = vpop.permute.xlu0 %528  ;;  %v539_v41 = vpop.permute.xlu1 %538 }
  0xa0   :  { %v554_v42 = vpop.permute.xlu0 %553  ;;  %v570_v43 = vpop.permute.xlu1 %569 }
  0xa4   :  { %v580_v44 = vpop.permute.xlu0 %579  ;;  %v549_v45 = vpop.permute.xlu1 %548 }
 0x102   :  { %v803_v48 = vpop.f32.mrf.mxu0 }
 0x103   :  { %v250_v9 = vadd.f32 %v803_v48, %v73_v8  ;;  %v565_v48 = vpop.permute.xlu0 %564  ;;  %v602_v8 = vld [vmem:[%s1163_s8] sm:$0x3] }
 0x104   :  { %v244_v49 = vpop.f32.mrf.mxu0 }
 0x105   :  { %v245_v12 = vadd.f32 %v244_v49, %v68_v11  ;;  %v284_v14 = vmax.f32 %v250_v9, 0.0 }
 0x106   :  { %v806_v51 = vpop.f32.mrf.mxu0 }
 0x107   :  { %v260_v4 = vadd.f32 %v806_v51, %v83_v0  ;;  %v283_v15 = vmax.f32 %v245_v12, 0.0 }
 0x108   :  { %v254_v53 = vpop.f32.mrf.mxu0 }
 0x109   :  { %v255_v6 = vadd.f32 %v254_v53, %v78_v3  ;;  %v286_v10 = vmax.f32 %v260_v4, 0.0 }
 0x10a   :  { %v809_v54 = vpop.f32.mrf.mxu0 }
 0x10b   :  { %v270_v61 = vadd.f32 %v809_v54, %v93_v52  ;;  %v285_v13 = vmax.f32 %v255_v6, 0.0  ;;  %v575_v52 = vpop.permute.xlu1 %574 }
 0x10c   :  { %v264_v56 = vpop.f32.mrf.mxu0 }
 0x10d   :  { %v265_v1 = vadd.f32 %v264_v56, %v88_v57  ;;  %v288_v5 = vmax.f32 %v270_v61, 0.0  ;;  %v590_v61 = vpop.permute.xlu0 %589 }
 0x10e   :  { %v812_v58 = vpop.f32.mrf.mxu0 }
 0x10f   :  { %v280_v59 = vadd.f32 %v812_v58, %v103_v50  ;;  %v287_v7 = vmax.f32 %v265_v1, 0.0  ;;  %v585_v3 = vpop.permute.xlu1 %584 }
 0x110   :  { %v274_v60 = vpop.f32.mrf.mxu0 }
 0x111   :  { %v290_v62 = vmax.f32 %v280_v59, 0.0  ;;  %v275_v63 = vadd.f32 %v274_v60, %v98_v55 }
 0x113   :  { %v289_v2 = vmax.f32 %v275_v63, 0.0  ;;  %813 = vmatprep.subr.mxu1 %v290_v62 }
 0x114   :  { %814 = vmatpush3.msra.mxu1 %v290_v62 }
 0x115   :  { %815 = vmatprep.subr.mxu1 %v289_v2 }
 0x116   :  { %816 = vmatpush3.msra.mxu1 %v289_v2 }
 0x117   :  { %817 = vmatprep.subr.mxu1 %v288_v5 }
 0x118   :  { %818 = vmatpush3.msra.mxu1 %v288_v5 }
 0x119   :  { %819 = vmatprep.subr.mxu1 %v287_v7 }
 0x11a   :  { %820 = vmatpush3.msra.mxu1 %v287_v7 }
 0x11b   :  { %821 = vmatprep.subr.mxu1 %v286_v10 }
 0x11c   :  { %822 = vmatpush3.msra.mxu1 %v286_v10 }
 0x11d   :  { %823 = vmatprep.subr.mxu1 %v285_v13 }
 0x11e   :  { %824 = vmatpush3.msra.mxu1 %v285_v13 }
 0x11f   :  { %825 = vmatprep.subr.mxu1 %v284_v14 }
 0x120   :  { %826 = vmatpush3.msra.mxu1 %v284_v14 }
 0x121   :  { %827 = vmatprep.subr.mxu1 %v283_v15 }
 0x122   :  { %828 = vmatpush3.msra.mxu1 %v283_v15 }
 0x123   :  { %830 = vmatmul.mubr.msk.f32.vlgmr.msra.gmra.mxu1 %vm305_vm1, %v292_v16 }
 0x124   :  { %836 = vmatprep.mubr.msk.f32.mxu1 %vm105_vm0, %v395_v17 }
 0x1e3   :  { %v831_v19 = vpop.f32.mrf.mxu1 }
 0x1e4   :  { %v384_v20 = vadd.f32 %v831_v19, %v303_v18 }
 0x1e5   :  { %v378_v22 = vpop.f32.mrf.mxu1 }
 0x1e6   :  { %v388_v23 = vmul.f32 0.5, %v384_v20  ;;  %v379_v24 = vadd.f32 %v378_v22, %v298_v21 }
 0x1e8   :  { %858 = vtanh.f32 %v388_v23  ;;  %v387_v25 = vmul.f32 0.5, %v379_v24 }
 0x1ea   :  { %860 = vtanh.f32 %v387_v25 }
 0x1f5   :  { %v859_v26 = vpop.eup %858 }
 0x1f6   :  { %v392_v27 = vmul.f32 0.5, %v859_v26 }
 0x1f7   :  { %v861_v28 = vpop.eup %860 }
 0x1f8   :  { %v394_v29 = vadd.f32 0.5, %v392_v27  ;;  %v391_v30 = vmul.f32 0.5, %v861_v28 }
 0x1fa   :  { %832 = vmatprep.subr.mxu1 %v394_v29  ;;  %v393_v31 = vadd.f32 0.5, %v391_v30 }
 0x1fb   :  { %833 = vmatpush3.msra.mxu1 %v394_v29 }
 0x1fc   :  { %834 = vmatprep.subr.mxu1 %v393_v31 }
 0x1fd   :  { %835 = vmatpush3.msra.mxu1 %v393_v31 }
 0x1fe   :  { %837 = vmatmul.mubr.msk.f32.vlgmr.msra.gmra.mxu1 %vm105_vm0, %v396_v32  ;;  %845 = vmatprep.subr.mxu1 %v885_v37 }
 0x1ff   :  { %839 = vmatprep.mubr.msk.f32.mxu1 %vm105_vm0, %v397_v33 }
 0x202   :  { %840 = vmatmul.mubr.msk.f32.gmra.mxu1 %vm105_vm0, %v398_v34 }
 0x203   :  { %842 = vmatprep.mubr.msk.f32.mxu1 %vm105_vm0, %v399_v35 }
 0x206   :  { %843 = vmatmul.mubr.msk.f32.gmra.mxu1 %vm105_vm0, %v400_v36 }
 0x207   :  { %849 = vmatprep.mubr.msk.f32.mxu1 %vm886_vm2, %v885_v37 }
 0x2be   :  { %v838_v46 = vpop.f32.mrf.mxu1 }
 0x2bf   :  { %v557_v50 = vmul.f32 %v838_v46, %v534_v38 }
 0x2c0   :  { %v485_v47 = vpop.f32.mrf.mxu1 }
 0x2c1   :  { %v556_v54 = vmul.f32 %v529_v40, %v485_v47  ;;  %v593_v58 = vadd.f32 %v570_v43, %v557_v50 }
 0x2c2   :  { %v841_v49 = vpop.f32.mrf.mxu1 }
 0x2c3   :  { %v559_v51 = vmul.f32 %v841_v49, %v544_v39  ;;  %v592_v63 = vadd.f32 %v565_v48, %v556_v54 }
 0x2c4   :  { %v495_v53 = vpop.f32.mrf.mxu1 }
 0x2c5   :  { %v595_v55 = vadd.f32 %v580_v44, %v559_v51  ;;  %v558_v56 = vmul.f32 %v539_v41, %v495_v53 }
 0x2c6   :  { %v844_v57 = vpop.f32.mrf.mxu1 }
 0x2c7   :  { %v594_v59 = vadd.f32 %v575_v52, %v558_v56  ;;  %v561_v60 = vmul.f32 %v844_v57, %v554_v42  ;;  %v599_v0 = vmul.f32 %v595_v55, %v593_v58 }
 0x2c8   :  { %v505_v62 = vpop.f32.mrf.mxu1 }
 0x2c9   :  { %v597_v1 = vadd.f32 %v590_v61, %v561_v60  ;;  %v560_v2 = vmul.f32 %v549_v45, %v505_v62  ;;  %v598_v4 = vmul.f32 %v594_v59, %v592_v63 }
 0x2cb   :  { %v601_v5 = vmul.f32 %v599_v0, %v597_v1  ;;  %v596_v6 = vadd.f32 %v585_v3, %v560_v2 }
 0x2cd   :  { %v600_v7 = vmul.f32 %v598_v4, %v596_v6  ;;  %846 = vmatpush3.msra.mxu1 %v601_v5 }
 0x2ce   :  { %847 = vmatprep.subr.mxu1 %v885_v37 }
 0x2cf   :  { %848 = vmatpush3.msra.mxu1 %v600_v7 }
 0x2d0   :  { %850 = vmatmul.mubr.msk.f32.vlgmr.msra.gmra.mxu1 %vm105_vm0, %v602_v8 }
 0x390   :  { %v672_v9 = vpop.f32.mrf.mxu1 }
 0x391   :  { %676 = vst [vmem:[#allocation2] sm:$0x3] %v672_v9 }
 0x392   :  { %v851_v10 = vpop.f32.mrf.mxu1 }
 0x393   :  { %873 = shalt.err (!%p870_p4)
}
 0x394   :  { %686 = dma.vmem_to_hbm [thread:$0]  %s684_s22, 32, %s1164_s9, [#allocation3]  }
 0x395   :  { %882 = dma.done.wait [#allocation3], 32  }
 0x396   :  { %883 = vsyncadd [#allocation3], 4294967264 }
 0x397   :  { %690 = vsyncpa [#allocation3], 1 }

</bundles_post_ra>
